<compile_context>
chip_gen: v7x
topology: tpu7x:2x2x1
jax: 0.10.0
libtpu: 0.0.40
codegen_flags: <defaults>
</compile_context>

<pallas_src>
import numpy as np
import jax
import jax.numpy as jnp
from jax.experimental import pallas as pl
from jax.experimental.pallas import tpu as pltpu

NEG_SLOPE = 0.2


# ----------------------------- Pallas kernel -------------------------------

def _mlp_logsoftmax_kernel(
    x_ref,
    w1, b1, w2, b2, w3, b3, w4, b4, w5, b5, w6, b6, w7, b7,
    out_ref,
):
    """Fused 6x[Linear -> LeakyReLU(0.2)] + Linear + log_softmax, one batch tile.

    Weights are bf16 [in, out]; biases f32 [1, out].  Matmuls accumulate in f32
    on the MXU; LeakyReLU fuses the bf16 downcast for the next layer's input;
    softmax math stays f32.
    """

    def lin(h_bf16, w_ref, b_ref):
        return jnp.dot(h_bf16, w_ref[...],
                       preferred_element_type=jnp.float32) + b_ref[...]

    def lrelu_bf16(y):
        # LeakyReLU(0.2) with the bf16 downcast fused in (input to next matmul).
        return jnp.maximum(y, NEG_SLOPE * y).astype(jnp.bfloat16)

    # In-kernel f32 -> bf16 cast of the input tile (hidden under the matmuls).
    h = x_ref[...].astype(jnp.bfloat16)          # [TILE_N, D]
    h = lrelu_bf16(lin(h, w1, b1))
    h = lrelu_bf16(lin(h, w2, b2))
    h = lrelu_bf16(lin(h, w3, b3))
    h = lrelu_bf16(lin(h, w4, b4))
    h = lrelu_bf16(lin(h, w5, b5))
    h = lrelu_bf16(lin(h, w6, b6))
    logits = lin(h, w7, b7)                      # [TILE_N, out_dim] f32

    # log_softmax over the class axis (f32).
    m = jnp.max(logits, axis=-1, keepdims=True)
    z = logits - m
    lse = jnp.log(jnp.sum(jnp.exp(z), axis=-1, keepdims=True))
    out_ref[...] = (z - lse).astype(out_ref.dtype)


# ------------------------------- wrapper ------------------------------------

def _round_up(x, m):
    return ((x + m - 1) // m) * m


def _cdiv(a, b):
    return -(-a // b)


def _choose_tile(n, tile_n):
    """Row-block multiple of 8, capped at tile_n; >=2 grid steps when N allows
    so the 'parallel' batch axis can shard across both v7x TensorCores."""
    tile = min(int(tile_n), _round_up(n, 8))
    if n >= 16:
        tile = min(tile, _round_up(_cdiv(n, 2), 8))
    return max(8, tile)


def occupation_discriminator_forward(ents_emb, params, users_sensitive, ents,
                                     tile_n=1024, out_dtype=jnp.bfloat16):
    """Replicates OccupationDiscriminator.forward(ents_emb, ents) (no loss).

    Returns (log_probs.squeeze(), labels).
    """
    N, D = ents_emb.shape
    out_dim = params[-1][0].shape[1]

    tile_n = _choose_tile(N, tile_n)
    grid = (_cdiv(N, tile_n),)          # ragged last block handled by Pallas

    in_specs = [pl.BlockSpec((tile_n, D), lambda i: (i, 0))]
    flat_args = []
    for w, b in params:
        flat_args.append(w)
        flat_args.append(b)
        # Constant block index -> weights/biases resident in VMEM across steps.
        in_specs.append(pl.BlockSpec(w.shape, lambda i: (0, 0)))
        in_specs.append(pl.BlockSpec(b.shape, lambda i: (0, 0)))

    log_probs = pl.pallas_call(
        _mlp_logsoftmax_kernel,
        out_shape=jax.ShapeDtypeStruct((N, out_dim), out_dtype),
        grid=grid,
        in_specs=in_specs,
        out_specs=pl.BlockSpec((tile_n, out_dim), lambda i: (i, 0)),
        compiler_params=pltpu.CompilerParams(
            dimension_semantics=("parallel",),
            vmem_limit_bytes=32 * 1024 * 1024,
        ),
    )(ents_emb, *flat_args)

    # Label lookup (glue, equivalent to users_sensitive[ents]).
    labels = jnp.take(users_sensitive, ents, axis=0)

    return jnp.squeeze(log_probs), labels


# --------------------------- parameter creation -----------------------------

def make_params(key, embed_dim, out_dim, lane_pad=128):
    """nn.Linear-style init (U(-1/sqrt(fan_in), +)), weights stored as [in, out].

    Hidden widths are zero-padded to multiples of `lane_pad` lanes; the input
    dim and the final out_dim stay unpadded.  Weights bf16, biases f32 [1, out].
    """
    D = int(embed_dim)
    true_dims = [D, 2 * D, 4 * D, 2 * D, 2 * D, D, D // 2, out_dim]
    pad_dims = ([true_dims[0]]
                + [_round_up(d, lane_pad) for d in true_dims[1:-1]]
                + [true_dims[-1]])

    params = []
    for i in range(len(true_dims) - 1):
        fi, fo = true_dims[i], true_dims[i + 1]
        pi, po = pad_dims[i], pad_dims[i + 1]
        bound = 1.0 / np.sqrt(fi)
        key, kw, kb = jax.random.split(key, 3)
        w = jax.random.uniform(kw, (fi, fo), jnp.float32, -bound, bound)
        b = jax.random.uniform(kb, (fo,), jnp.float32, -bound, bound)
        w_pad = jnp.zeros((pi, po), jnp.float32).at[:fi, :fo].set(w)
        b_pad = jnp.zeros((1, po), jnp.float32).at[0, :fo].set(b)
        params.append((w_pad.astype(jnp.bfloat16), b_pad))
    return params


# --------------------------- pure-JAX reference ------------------------------

def _reference_forward(ents_emb, params):
    h = ents_emb.astype(jnp.bfloat16)
    for idx, (w, b) in enumerate(params):
        y = jnp.dot(h.astype(jnp.bfloat16), w,
                    preferred_element_type=jnp.float32) + b
        if idx < len(params) - 1:
            y = jnp.maximum(y, NEG_SLOPE * y)
        h = y
    return jax.nn.log_softmax(h, axis=-1)


# --------------------------------- main -------------------------------------

if __name__ == "__main__":
    key = jax.random.PRNGKey(0)

    # Small shapes consistent with the module (use_1M=True -> out_dim=21).
    embed_dim = 32
    out_dim = 21
    batch = 8
    num_users = 64

    k_emb, k_sens, k_ents, k_params = jax.random.split(key, 4)

    # Synthetic "attribute_data": per-user occupation labels in [0, 21).
    users_sensitive = jax.random.randint(k_sens, (num_users,), 0, out_dim, jnp.int32)

    # Inputs to forward().
    ents_emb = jax.random.normal(k_emb, (batch, embed_dim), jnp.float32)
    ents = jax.random.randint(k_ents, (batch,), 0, num_users, jnp.int32)

    params = make_params(k_params, embed_dim, out_dim)

    log_probs, labels = occupation_discriminator_forward(
        ents_emb, params, users_sensitive, ents
    )
    jax.block_until_ready((log_probs, labels))

    # Sanity: shapes, valid log-softmax, and agreement with pure-JAX reference.
    assert log_probs.shape == (batch, out_dim)
    assert labels.shape == (batch,)
    lp32 = log_probs.astype(jnp.float32)
    row_sums = jnp.sum(jnp.exp(lp32), axis=-1)
    assert bool(jnp.all(jnp.abs(row_sums - 1.0) < 3e-2))   # bf16 output rounding
    ref = _reference_forward(ents_emb, params)
    assert bool(jnp.max(jnp.abs(lp32 - ref)) < 7.5e-2)

    # Exercise the multi-tile + ragged-remainder path (grid > 1, N % tile_n != 0).
    batch2 = 300
    k_emb2, k_ents2 = jax.random.split(k_emb)
    ents_emb2 = jax.random.normal(k_emb2, (batch2, embed_dim), jnp.float32)
    ents2 = jax.random.randint(k_ents2, (batch2,), 0, num_users, jnp.int32)
    log_probs2, labels2 = occupation_discriminator_forward(
        ents_emb2, params, users_sensitive, ents2, tile_n=128
    )
    jax.block_until_ready((log_probs2, labels2))
    assert log_probs2.shape == (batch2, out_dim)
    assert labels2.shape == (batch2,)
    lp32_2 = log_probs2.astype(jnp.float32)
    row_sums2 = jnp.sum(jnp.exp(lp32_2), axis=-1)
    assert bool(jnp.all(jnp.abs(row_sums2 - 1.0) < 3e-2))
    ref2 = _reference_forward(ents_emb2, params)
    assert bool(jnp.max(jnp.abs(lp32_2 - ref2)) < 7.5e-2)

    # Also exercise the f32-output path once.
    log_probs3, _ = occupation_discriminator_forward(
        ents_emb, params, users_sensitive, ents, out_dtype=jnp.float32
    )
    jax.block_until_ready(log_probs3)
    assert bool(jnp.max(jnp.abs(log_probs3 - ref)) < 5e-2)

    print("KERNEL_OK")
</pallas_src>

<mosaic_0001>
module attributes {stable_mosaic.version = 11 : i64} {
  func.func @_mlp_logsoftmax_kernel(%arg0: i32, %arg1: memref<8x32xf32, #tpu.memory_space<vmem>>, %arg2: memref<32x128xbf16, #tpu.memory_space<vmem>>, %arg3: memref<1x128xf32, #tpu.memory_space<vmem>>, %arg4: memref<128x128xbf16, #tpu.memory_space<vmem>>, %arg5: memref<1x128xf32, #tpu.memory_space<vmem>>, %arg6: memref<128x128xbf16, #tpu.memory_space<vmem>>, %arg7: memref<1x128xf32, #tpu.memory_space<vmem>>, %arg8: memref<128x128xbf16, #tpu.memory_space<vmem>>, %arg9: memref<1x128xf32, #tpu.memory_space<vmem>>, %arg10: memref<128x128xbf16, #tpu.memory_space<vmem>>, %arg11: memref<1x128xf32, #tpu.memory_space<vmem>>, %arg12: memref<128x128xbf16, #tpu.memory_space<vmem>>, %arg13: memref<1x128xf32, #tpu.memory_space<vmem>>, %arg14: memref<128x21xbf16, #tpu.memory_space<vmem>>, %arg15: memref<1x21xf32, #tpu.memory_space<vmem>>, %arg16: memref<8x21xbf16, #tpu.memory_space<vmem>>) attributes {dimension_semantics = [#tpu.dimension_semantics<parallel>], iteration_bounds = array<i64: 1>, scalar_prefetch = 0 : i64, scratch_operands = 0 : i64, tpu.core_type = #tpu.core_type<tc>, window_params = [{transform_indices = @transform_0, window_bounds = array<i64: 8, 32>}, {pipeline_mode = #tpu.pipeline_mode<synchronous>, transform_indices = @transform_1, window_bounds = array<i64: 32, 128>}, {pipeline_mode = #tpu.pipeline_mode<synchronous>, transform_indices = @transform_2, window_bounds = array<i64: 1, 128>}, {pipeline_mode = #tpu.pipeline_mode<synchronous>, transform_indices = @transform_3, window_bounds = array<i64: 128, 128>}, {pipeline_mode = #tpu.pipeline_mode<synchronous>, transform_indices = @transform_4, window_bounds = array<i64: 1, 128>}, {pipeline_mode = #tpu.pipeline_mode<synchronous>, transform_indices = @transform_5, window_bounds = array<i64: 128, 128>}, {pipeline_mode = #tpu.pipeline_mode<synchronous>, transform_indices = @transform_6, window_bounds = array<i64: 1, 128>}, {pipeline_mode = #tpu.pipeline_mode<synchronous>, transform_indices = @transform_7, window_bounds = array<i64: 128, 128>}, {pipeline_mode = #tpu.pipeline_mode<synchronous>, transform_indices = @transform_8, window_bounds = array<i64: 1, 128>}, {pipeline_mode = #tpu.pipeline_mode<synchronous>, transform_indices = @transform_9, window_bounds = array<i64: 128, 128>}, {pipeline_mode = #tpu.pipeline_mode<synchronous>, transform_indices = @transform_10, window_bounds = array<i64: 1, 128>}, {pipeline_mode = #tpu.pipeline_mode<synchronous>, transform_indices = @transform_11, window_bounds = array<i64: 128, 128>}, {pipeline_mode = #tpu.pipeline_mode<synchronous>, transform_indices = @transform_12, window_bounds = array<i64: 1, 128>}, {pipeline_mode = #tpu.pipeline_mode<synchronous>, transform_indices = @transform_13, window_bounds = array<i64: 128, 21>}, {pipeline_mode = #tpu.pipeline_mode<synchronous>, transform_indices = @transform_14, window_bounds = array<i64: 1, 21>}, {transform_indices = @transform_15, window_bounds = array<i64: 8, 21>}]} {
    %c0 = arith.constant 0 : index
    %c0_0 = arith.constant 0 : index
    %0 = vector.load %arg1[%c0, %c0_0] : memref<8x32xf32, #tpu.memory_space<vmem>>, vector<8x32xf32>
    %1 = arith.truncf %0 : vector<8x32xf32> to vector<8x32xbf16>
    %c0_1 = arith.constant 0 : index
    %c0_2 = arith.constant 0 : index
    %2 = vector.load %arg2[%c0_1, %c0_2] : memref<32x128xbf16, #tpu.memory_space<vmem>>, vector<32x128xbf16>
    %cst = arith.constant dense<0.000000e+00> : vector<8x128xf32>
    %3 = tpu.matmul %1, %2, %cst {dimension_numbers = #tpu.dot_dimension_numbers<[1], [0], [0], [1], [0, 0, 1, 1], [], []>} : vector<8x32xbf16>, vector<32x128xbf16>, vector<8x128xf32> -> vector<8x128xf32>
    %c0_3 = arith.constant 0 : index
    %c0_4 = arith.constant 0 : index
    %4 = vector.load %arg3[%c0_3, %c0_4] : memref<1x128xf32, #tpu.memory_space<vmem>>, vector<1x128xf32>
    %5 = vector.broadcast %4 : vector<1x128xf32> to vector<8x128xf32>
    %6 = arith.addf %3, %5 : vector<8x128xf32>
    %cst_5 = arith.constant 2.000000e-01 : f32
    %7 = vector.broadcast %cst_5 : f32 to vector<8x128xf32>
    %8 = arith.mulf %7, %6 : vector<8x128xf32>
    %9 = arith.maximumf %6, %8 : vector<8x128xf32>
    %10 = arith.truncf %9 : vector<8x128xf32> to vector<8x128xbf16>
    %c0_6 = arith.constant 0 : index
    %c0_7 = arith.constant 0 : index
    %11 = vector.load %arg4[%c0_6, %c0_7] : memref<128x128xbf16, #tpu.memory_space<vmem>>, vector<128x128xbf16>
    %cst_8 = arith.constant dense<0.000000e+00> : vector<8x128xf32>
    %12 = tpu.matmul %10, %11, %cst_8 {dimension_numbers = #tpu.dot_dimension_numbers<[1], [0], [0], [1], [0, 0, 1, 1], [], []>} : vector<8x128xbf16>, vector<128x128xbf16>, vector<8x128xf32> -> vector<8x128xf32>
    %c0_9 = arith.constant 0 : index
    %c0_10 = arith.constant 0 : index
    %13 = vector.load %arg5[%c0_9, %c0_10] : memref<1x128xf32, #tpu.memory_space<vmem>>, vector<1x128xf32>
    %14 = vector.broadcast %13 : vector<1x128xf32> to vector<8x128xf32>
    %15 = arith.addf %12, %14 : vector<8x128xf32>
    %cst_11 = arith.constant 2.000000e-01 : f32
    %16 = vector.broadcast %cst_11 : f32 to vector<8x128xf32>
    %17 = arith.mulf %16, %15 : vector<8x128xf32>
    %18 = arith.maximumf %15, %17 : vector<8x128xf32>
    %19 = arith.truncf %18 : vector<8x128xf32> to vector<8x128xbf16>
    %c0_12 = arith.constant 0 : index
    %c0_13 = arith.constant 0 : index
    %20 = vector.load %arg6[%c0_12, %c0_13] : memref<128x128xbf16, #tpu.memory_space<vmem>>, vector<128x128xbf16>
    %cst_14 = arith.constant dense<0.000000e+00> : vector<8x128xf32>
    %21 = tpu.matmul %19, %20, %cst_14 {dimension_numbers = #tpu.dot_dimension_numbers<[1], [0], [0], [1], [0, 0, 1, 1], [], []>} : vector<8x128xbf16>, vector<128x128xbf16>, vector<8x128xf32> -> vector<8x128xf32>
    %c0_15 = arith.constant 0 : index
    %c0_16 = arith.constant 0 : index
    %22 = vector.load %arg7[%c0_15, %c0_16] : memref<1x128xf32, #tpu.memory_space<vmem>>, vector<1x128xf32>
    %23 = vector.broadcast %22 : vector<1x128xf32> to vector<8x128xf32>
    %24 = arith.addf %21, %23 : vector<8x128xf32>
    %cst_17 = arith.constant 2.000000e-01 : f32
    %25 = vector.broadcast %cst_17 : f32 to vector<8x128xf32>
    %26 = arith.mulf %25, %24 : vector<8x128xf32>
    %27 = arith.maximumf %24, %26 : vector<8x128xf32>
    %28 = arith.truncf %27 : vector<8x128xf32> to vector<8x128xbf16>
    %c0_18 = arith.constant 0 : index
    %c0_19 = arith.constant 0 : index
    %29 = vector.load %arg8[%c0_18, %c0_19] : memref<128x128xbf16, #tpu.memory_space<vmem>>, vector<128x128xbf16>
    %cst_20 = arith.constant dense<0.000000e+00> : vector<8x128xf32>
    %30 = tpu.matmul %28, %29, %cst_20 {dimension_numbers = #tpu.dot_dimension_numbers<[1], [0], [0], [1], [0, 0, 1, 1], [], []>} : vector<8x128xbf16>, vector<128x128xbf16>, vector<8x128xf32> -> vector<8x128xf32>
    %c0_21 = arith.constant 0 : index
    %c0_22 = arith.constant 0 : index
    %31 = vector.load %arg9[%c0_21, %c0_22] : memref<1x128xf32, #tpu.memory_space<vmem>>, vector<1x128xf32>
    %32 = vector.broadcast %31 : vector<1x128xf32> to vector<8x128xf32>
    %33 = arith.addf %30, %32 : vector<8x128xf32>
    %cst_23 = arith.constant 2.000000e-01 : f32
    %34 = vector.broadcast %cst_23 : f32 to vector<8x128xf32>
    %35 = arith.mulf %34, %33 : vector<8x128xf32>
    %36 = arith.maximumf %33, %35 : vector<8x128xf32>
    %37 = arith.truncf %36 : vector<8x128xf32> to vector<8x128xbf16>
    %c0_24 = arith.constant 0 : index
    %c0_25 = arith.constant 0 : index
    %38 = vector.load %arg10[%c0_24, %c0_25] : memref<128x128xbf16, #tpu.memory_space<vmem>>, vector<128x128xbf16>
    %cst_26 = arith.constant dense<0.000000e+00> : vector<8x128xf32>
    %39 = tpu.matmul %37, %38, %cst_26 {dimension_numbers = #tpu.dot_dimension_numbers<[1], [0], [0], [1], [0, 0, 1, 1], [], []>} : vector<8x128xbf16>, vector<128x128xbf16>, vector<8x128xf32> -> vector<8x128xf32>
    %c0_27 = arith.constant 0 : index
    %c0_28 = arith.constant 0 : index
    %40 = vector.load %arg11[%c0_27, %c0_28] : memref<1x128xf32, #tpu.memory_space<vmem>>, vector<1x128xf32>
    %41 = vector.broadcast %40 : vector<1x128xf32> to vector<8x128xf32>
    %42 = arith.addf %39, %41 : vector<8x128xf32>
    %cst_29 = arith.constant 2.000000e-01 : f32
    %43 = vector.broadcast %cst_29 : f32 to vector<8x128xf32>
    %44 = arith.mulf %43, %42 : vector<8x128xf32>
    %45 = arith.maximumf %42, %44 : vector<8x128xf32>
    %46 = arith.truncf %45 : vector<8x128xf32> to vector<8x128xbf16>
    %c0_30 = arith.constant 0 : index
    %c0_31 = arith.constant 0 : index
    %47 = vector.load %arg12[%c0_30, %c0_31] : memref<128x128xbf16, #tpu.memory_space<vmem>>, vector<128x128xbf16>
    %cst_32 = arith.constant dense<0.000000e+00> : vector<8x128xf32>
    %48 = tpu.matmul %46, %47, %cst_32 {dimension_numbers = #tpu.dot_dimension_numbers<[1], [0], [0], [1], [0, 0, 1, 1], [], []>} : vector<8x128xbf16>, vector<128x128xbf16>, vector<8x128xf32> -> vector<8x128xf32>
    %c0_33 = arith.constant 0 : index
    %c0_34 = arith.constant 0 : index
    %49 = vector.load %arg13[%c0_33, %c0_34] : memref<1x128xf32, #tpu.memory_space<vmem>>, vector<1x128xf32>
    %50 = vector.broadcast %49 : vector<1x128xf32> to vector<8x128xf32>
    %51 = arith.addf %48, %50 : vector<8x128xf32>
    %cst_35 = arith.constant 2.000000e-01 : f32
    %52 = vector.broadcast %cst_35 : f32 to vector<8x128xf32>
    %53 = arith.mulf %52, %51 : vector<8x128xf32>
    %54 = arith.maximumf %51, %53 : vector<8x128xf32>
    %55 = arith.truncf %54 : vector<8x128xf32> to vector<8x128xbf16>
    %c0_36 = arith.constant 0 : index
    %c0_37 = arith.constant 0 : index
    %56 = vector.load %arg14[%c0_36, %c0_37] : memref<128x21xbf16, #tpu.memory_space<vmem>>, vector<128x21xbf16>
    %cst_38 = arith.constant dense<0.000000e+00> : vector<8x21xf32>
    %57 = tpu.matmul %55, %56, %cst_38 {dimension_numbers = #tpu.dot_dimension_numbers<[1], [0], [0], [1], [0, 0, 1, 1], [], []>} : vector<8x128xbf16>, vector<128x21xbf16>, vector<8x21xf32> -> vector<8x21xf32>
    %c0_39 = arith.constant 0 : index
    %c0_40 = arith.constant 0 : index
    %58 = vector.load %arg15[%c0_39, %c0_40] : memref<1x21xf32, #tpu.memory_space<vmem>>, vector<1x21xf32>
    %59 = vector.broadcast %58 : vector<1x21xf32> to vector<8x21xf32>
    %60 = arith.addf %57, %59 : vector<8x21xf32>
    %cst_41 = arith.constant dense<0xFF800000> : vector<8xf32>
    %61 = vector.multi_reduction <maximumf>, %60, %cst_41 [1] : vector<8x21xf32> to vector<8xf32>
    %62 = vector.shape_cast %61 : vector<8xf32> to vector<8x1xf32>
    %63 = vector.broadcast %62 : vector<8x1xf32> to vector<8x21xf32>
    %64 = arith.subf %60, %63 : vector<8x21xf32>
    %65 = math.exp %64 : vector<8x21xf32>
    %cst_42 = arith.constant dense<0.000000e+00> : vector<8xf32>
    %66 = vector.multi_reduction <add>, %65, %cst_42 [1] : vector<8x21xf32> to vector<8xf32>
    %67 = vector.shape_cast %66 : vector<8xf32> to vector<8x1xf32>
    %68 = math.log %67 : vector<8x1xf32>
    %69 = vector.broadcast %68 : vector<8x1xf32> to vector<8x21xf32>
    %70 = arith.subf %64, %69 : vector<8x21xf32>
    %71 = arith.truncf %70 : vector<8x21xf32> to vector<8x21xbf16>
    %c0_43 = arith.constant 0 : index
    %c0_44 = arith.constant 0 : index
    %72 = vector.load %arg16[%c0_43, %c0_44] : memref<8x21xbf16, #tpu.memory_space<vmem>>, vector<8x21xbf16>
    tpu.vector_store %arg16[%c0_43, %c0_44], %71 {strides = array<i32>} : memref<8x21xbf16, #tpu.memory_space<vmem>>, vector<8x21xbf16>,
    return
  }
  func.func @transform_0(%arg0: i32) -> (i32, i32) {
    %c0_i32 = arith.constant 0 : i32
    %c0_i32_0 = arith.constant 0 : i32
    return %arg0, %c0_i32 : i32, i32
  }
  func.func @transform_1(%arg0: i32) -> (i32, i32) {
    %c0_i32 = arith.constant 0 : i32
    %c0_i32_0 = arith.constant 0 : i32
    %c0_i32_1 = arith.constant 0 : i32
    return %c0_i32, %c0_i32_0 : i32, i32
  }
  func.func @transform_2(%arg0: i32) -> (i32, i32) {
    %c0_i32 = arith.constant 0 : i32
    %c0_i32_0 = arith.constant 0 : i32
    %c0_i32_1 = arith.constant 0 : i32
    return %c0_i32, %c0_i32_0 : i32, i32
  }
  func.func @transform_3(%arg0: i32) -> (i32, i32) {
    %c0_i32 = arith.constant 0 : i32
    %c0_i32_0 = arith.constant 0 : i32
    %c0_i32_1 = arith.constant 0 : i32
    return %c0_i32, %c0_i32_0 : i32, i32
  }
  func.func @transform_4(%arg0: i32) -> (i32, i32) {
    %c0_i32 = arith.constant 0 : i32
    %c0_i32_0 = arith.constant 0 : i32
    %c0_i32_1 = arith.constant 0 : i32
    return %c0_i32, %c0_i32_0 : i32, i32
  }
  func.func @transform_5(%arg0: i32) -> (i32, i32) {
    %c0_i32 = arith.constant 0 : i32
    %c0_i32_0 = arith.constant 0 : i32
    %c0_i32_1 = arith.constant 0 : i32
    return %c0_i32, %c0_i32_0 : i32, i32
  }
  func.func @transform_6(%arg0: i32) -> (i32, i32) {
    %c0_i32 = arith.constant 0 : i32
    %c0_i32_0 = arith.constant 0 : i32
    %c0_i32_1 = arith.constant 0 : i32
    return %c0_i32, %c0_i32_0 : i32, i32
  }
  func.func @transform_7(%arg0: i32) -> (i32, i32) {
    %c0_i32 = arith.constant 0 : i32
    %c0_i32_0 = arith.constant 0 : i32
    %c0_i32_1 = arith.constant 0 : i32
    return %c0_i32, %c0_i32_0 : i32, i32
  }
  func.func @transform_8(%arg0: i32) -> (i32, i32) {
    %c0_i32 = arith.constant 0 : i32
    %c0_i32_0 = arith.constant 0 : i32
    %c0_i32_1 = arith.constant 0 : i32
    return %c0_i32, %c0_i32_0 : i32, i32
  }
  func.func @transform_9(%arg0: i32) -> (i32, i32) {
    %c0_i32 = arith.constant 0 : i32
    %c0_i32_0 = arith.constant 0 : i32
    %c0_i32_1 = arith.constant 0 : i32
    return %c0_i32, %c0_i32_0 : i32, i32
  }
  func.func @transform_10(%arg0: i32) -> (i32, i32) {
    %c0_i32 = arith.constant 0 : i32
    %c0_i32_0 = arith.constant 0 : i32
    %c0_i32_1 = arith.constant 0 : i32
    return %c0_i32, %c0_i32_0 : i32, i32
  }
  func.func @transform_11(%arg0: i32) -> (i32, i32) {
    %c0_i32 = arith.constant 0 : i32
    %c0_i32_0 = arith.constant 0 : i32
    %c0_i32_1 = arith.constant 0 : i32
    return %c0_i32, %c0_i32_0 : i32, i32
  }
  func.func @transform_12(%arg0: i32) -> (i32, i32) {
    %c0_i32 = arith.constant 0 : i32
    %c0_i32_0 = arith.constant 0 : i32
    %c0_i32_1 = arith.constant 0 : i32
    return %c0_i32, %c0_i32_0 : i32, i32
  }
  func.func @transform_13(%arg0: i32) -> (i32, i32) {
    %c0_i32 = arith.constant 0 : i32
    %c0_i32_0 = arith.constant 0 : i32
    %c0_i32_1 = arith.constant 0 : i32
    return %c0_i32, %c0_i32_0 : i32, i32
  }
  func.func @transform_14(%arg0: i32) -> (i32, i32) {
    %c0_i32 = arith.constant 0 : i32
    %c0_i32_0 = arith.constant 0 : i32
    %c0_i32_1 = arith.constant 0 : i32
    return %c0_i32, %c0_i32_0 : i32, i32
  }
  func.func @transform_15(%arg0: i32) -> (i32, i32) {
    %c0_i32 = arith.constant 0 : i32
    %c0_i32_0 = arith.constant 0 : i32
    return %arg0, %c0_i32 : i32, i32
  }
}

</mosaic_0001>

<bundles_post_ra>
// kernel: tpu_custom_call.1
= control target key start
LH: loop header
LB: loop body
LE: loop exit
PB: predicated region body
PF: predicated region fallthrough
CT: control target
= control target key end

     0   :  { %s1664_s0 = inlined_call_operand.hbm [shape: f32[8,32], index: 0, kind: input, shape index: {}]   ;;  %s1665_s1 = inlined_call_operand.vmem [shape: bf16[32,128], index: 1, kind: input, shape index: {}]   ;;  %s1666_s2 = inlined_call_operand.vmem [shape: f32[1,128], index: 2, kind: input, shape index: {}]   ;;  %s1667_s3 = inlined_call_operand.vmem [shape: bf16[128,128], index: 3, kind: input, shape index: {}]   ;;  %s1668_s4 = inlined_call_operand.vmem [shape: f32[1,128], index: 4, kind: input, shape index: {}]   ;;  %s1669_s5 = inlined_call_operand.hbm [shape: bf16[128,128], index: 5, kind: input, shape index: {}]   ;;  %s1670_s6 = inlined_call_operand.vmem [shape: f32[1,128], index: 6, kind: input, shape index: {}]   ;;  %s1671_s7 = inlined_call_operand.hbm [shape: bf16[128,128], index: 7, kind: input, shape index: {}]   ;;  %s1672_s8 = inlined_call_operand.vmem [shape: f32[1,128], index: 8, kind: input, shape index: {}]   ;;  %s1673_s9 = inlined_call_operand.hbm [shape: bf16[128,128], index: 9, kind: input, shape index: {}]   ;;  %s1674_s10 = inlined_call_operand.vmem [shape: f32[1,128], index: 10, kind: input, shape index: {}]   ;;  %s1675_s11 = inlined_call_operand.hbm [shape: bf16[128,128], index: 11, kind: input, shape index: {}]   ;;  %s1676_s12 = inlined_call_operand.vmem [shape: f32[1,128], index: 12, kind: input, shape index: {}]   ;;  %s1677_s13 = inlined_call_operand.vmem [shape: bf16[128,21], index: 13, kind: input, shape index: {}]   ;;  %s1678_s14 = inlined_call_operand.vmem [shape: f32[1,21], index: 14, kind: input, shape index: {}]   ;;  %s1679_s15 = inlined_call_operand.hbm [shape: bf16[8,21], index: 15, kind: output, shape index: {}]  }
   0x1   :  { %1681 = sst [smem:[#allocation16_spill]] %s1679_s15 }
   0x2   :  { %20 = vsyncpa [#allocation3], 0 }
   0x3   :  { %21 = vsyncpa [#allocation6], 0 }
   0x4   :  { %22 = vsyncpa [#allocation9], 0 }
   0x5   :  { %23 = vsyncpa [#allocation4], 0  ;;  %s1351_s18 = smov [#allocation5]   ;;  %s1211_s22 = scalar_lea.hbm %s1669_s5, 1024 }
   0x6   :  { %s47_s19 = sshll.u32 %s1351_s18, 4  ;;  %p1212_p0 = scmp.ne.s32.totalorder %s1669_s5, %s1211_s22  ;;  %s48_s19 = int_to_ptr.vmem [resolvable:$true] %s47_s19 }
   0x7   :  { %p1215_p1 = scmp.lt.u32.totalorder %s1211_s22, %s1669_s5 }
   0x9   :  { %p1217_p2 = pnand %p1215_p1, %p1212_p0 }
   0xb   :  { %1220 = shalt.err (!%p1217_p2)
}
   0xc   :  { %s1221_s27 = scalar_lea.vmem %s48_s19, 1024  ;;  %p1226_p4 = scmp.lt.s32.totalorder %s48_s19, %s48_s19 }
   0xd   :  { %p1222_p3 = scmp.ne.s32.totalorder %s48_s19, %s1221_s27  ;;  %p1227_p5 = scmp.lt.s32.totalorder %s1221_s27, %s1221_s27 }
   0xf   :  { %p1228_p6 = por %p1227_p5, %p1226_p4 }
  0x11   :  { %p1229_p7 = pnand %p1228_p6, %p1222_p3 }
  0x13   :  { %1232 = shalt.err (!%p1229_p7)
}
  0x14   :  { %s1352_s28 = smov 64   ;;  %s1353_s29 = smov 4  }
  0x15   :  { %53 = dma.hbm_to_vmem [thread:$0]  %s1669_s5, 1024, %s48_s19, [#allocation6], %s1352_s28, %s1352_s28, %s1353_s29  }
  0x16   :  { %s1354_s17 = smov [#allocation8]   ;;  %s1355_s20 = smov [#allocation2]  }
  0x17   :  { %s75_s18 = sshll.u32 %s1354_s17, 4  ;;  %s30_s21 = sshll.u32 %s1355_s20, 4  ;;  %s76_s18 = int_to_ptr.vmem [resolvable:$true] %s75_s18  ;;  %s31_s21 = int_to_ptr.vmem [resolvable:$true] %s30_s21 }
  0x18   :  { %s1233_s24 = scalar_lea.hbm %s1673_s9, 1024 }
  0x19   :  { %p1234_p8 = scmp.ne.s32.totalorder %s1673_s9, %s1233_s24  ;;  %p1237_p9 = scmp.lt.u32.totalorder %s1233_s24, %s1673_s9 }
  0x1b   :  { %p1239_p10 = pnand %p1237_p9, %p1234_p8 }
  0x1d   :  { %1242 = shalt.err (!%p1239_p10)
}
  0x1e   :  { %s1243_s5 = scalar_lea.vmem %s76_s18, 1024  ;;  %p1248_p12 = scmp.lt.s32.totalorder %s76_s18, %s76_s18 }
  0x1f   :  { %p1244_p11 = scmp.ne.s32.totalorder %s76_s18, %s1243_s5  ;;  %p1249_p13 = scmp.lt.s32.totalorder %s1243_s5, %s1243_s5 }
  0x21   :  { %p1250_p0 = por %p1249_p13, %p1248_p12 }
  0x23   :  { %p1251_p1 = pnand %p1250_p0, %p1244_p11 }
  0x25   :  { %1254 = shalt.err (!%p1251_p1)
}
  0x26   :  { %81 = dma.hbm_to_vmem [thread:$0]  %s1673_s9, 1024, %s76_s18, [#allocation9], %s1352_s28, %s1352_s28, %s1353_s29  }
  0x27   :  { %s1255_s17 = scalar_lea.hbm %s1664_s0, 128 }
  0x28   :  { %p1256_p2 = scmp.ne.s32.totalorder %s1664_s0, %s1255_s17  ;;  %p1259_p3 = scmp.lt.u32.totalorder %s1255_s17, %s1664_s0 }
  0x2a   :  { %p1261_p4 = pnand %p1259_p3, %p1256_p2 }
  0x2c   :  { %1264 = shalt.err (!%p1261_p4)
}
  0x2d   :  { %s1265_s25 = scalar_lea.vmem %s31_s21, 128  ;;  %p1270_p6 = scmp.lt.s32.totalorder %s31_s21, %s31_s21 }
  0x2e   :  { %p1266_p5 = scmp.ne.s32.totalorder %s31_s21, %s1265_s25  ;;  %p1271_p7 = scmp.lt.s32.totalorder %s1265_s25, %s1265_s25 }
  0x30   :  { %p1272_p8 = por %p1271_p7, %p1270_p6 }
  0x32   :  { %p1273_p9 = pnand %p1272_p8, %p1266_p5 }
  0x34   :  { %1276 = shalt.err (!%p1273_p9)
}
  0x35   :  { %33 = dma.hbm_to_vmem [thread:$0]  %s1664_s0, 128, %s31_s21, [#allocation3]  }
  0x36   :  { %s1356_s26 = smov [#allocation7]   ;;  %s1357_s5 = smov [#allocation10]  }
  0x37   :  { %s61_s27 = sshll.u32 %s1356_s26, 4  ;;  %s89_s19 = sshll.u32 %s1357_s5, 4  ;;  %s62_s27 = int_to_ptr.vmem [resolvable:$true] %s61_s27  ;;  %s90_s19 = int_to_ptr.vmem [resolvable:$true] %s89_s19 }
  0x38   :  { %s1277_s15 = scalar_lea.hbm %s1671_s7, 1024 }
  0x39   :  { %p1278_p10 = scmp.ne.s32.totalorder %s1671_s7, %s1277_s15  ;;  %p1281_p11 = scmp.lt.u32.totalorder %s1277_s15, %s1671_s7 }
  0x3b   :  { %p1283_p12 = pnand %p1281_p11, %p1278_p10 }
  0x3d   :  { %1286 = shalt.err (!%p1283_p12)
}
  0x3e   :  { %s1287_s0 = scalar_lea.vmem %s62_s27, 1024  ;;  %p1292_p0 = scmp.lt.s32.totalorder %s62_s27, %s62_s27 }
  0x3f   :  { %p1288_p13 = scmp.ne.s32.totalorder %s62_s27, %s1287_s0  ;;  %p1293_p1 = scmp.lt.s32.totalorder %s1287_s0, %s1287_s0 }
  0x41   :  { %p1294_p2 = por %p1293_p1, %p1292_p0 }
  0x43   :  { %p1295_p3 = pnand %p1294_p2, %p1288_p13 }
  0x45   :  { %1298 = shalt.err (!%p1295_p3)
}
  0x46   :  { %67 = dma.hbm_to_vmem [thread:$0]  %s1671_s7, 1024, %s62_s27, [#allocation6], %s1352_s28, %s1352_s28, %s1353_s29  }
  0x47   :  { %s1299_s18 = scalar_lea.hbm %s1675_s11, 1024 }
  0x48   :  { %p1300_p4 = scmp.ne.s32.totalorder %s1675_s11, %s1299_s18  ;;  %p1303_p5 = scmp.lt.u32.totalorder %s1299_s18, %s1675_s11 }
  0x4a   :  { %p1305_p6 = pnand %p1303_p5, %p1300_p4 }
  0x4c   :  { %1308 = shalt.err (!%p1305_p6)
}
  0x4d   :  { %s1309_s15 = scalar_lea.vmem %s90_s19, 1024  ;;  %p1314_p8 = scmp.lt.s32.totalorder %s90_s19, %s90_s19 }
  0x4e   :  { %p1310_p7 = scmp.ne.s32.totalorder %s90_s19, %s1309_s15  ;;  %p1315_p9 = scmp.lt.s32.totalorder %s1309_s15, %s1309_s15 }
  0x50   :  { %p1316_p10 = por %p1315_p9, %p1314_p8 }
  0x52   :  { %p1317_p11 = pnand %p1316_p10, %p1310_p7 }
  0x54   :  { %1320 = shalt.err (!%p1317_p11)
}
  0x55   :  { %95 = dma.hbm_to_vmem [thread:$0]  %s1675_s11, 1024, %s90_s19, [#allocation9], %s1352_s28, %s1352_s28, %s1353_s29  }
  0x56   :  { %1343 = dma.done.wait [#allocation3], 128  }
  0x57   :  { %1344 = vsyncadd [#allocation3], 4294967168 }
  0x58   :  { %1345 = dma.done.wait [#allocation6], 2048  }
  0x59   :  { %1346 = vsyncadd [#allocation6], 4294965248 }
  0x5a   :  { %1347 = dma.done.wait [#allocation9], 2048  }
  0x5b   :  { %1348 = vsyncadd [#allocation9], 4294965248  ;;  %v1358_v0 = vmov 0.0   ;;  %vm1359_vm0 = vmmov 0   ;;  %v1157_v1 = vld [vmem:[%s1665_s1] sm:$0xff]   ;;  %v1158_v2 = vld [vmem:[%s1665_s1 + $0x8] sm:$0xff]  }
  0x5c   :  { %1019 = vmatprep.subr.bf16.mxu0 %v1358_v0  ;;  %1023 = vmatprep.mubr.msk.bf16.mxu0 %vm1359_vm0, %v1358_v0  ;;  %v118_v3 = vld [vmem:[#allocation2] sm:$0xff]  ;;  %v1160_v6 = vld [vmem:[%s1667_s3 + $0x8] sm:$0xff]   ;;  %vm143_vm1 = vcmask 261120   ;;  %v1161_v7 = vld [vmem:[%s1667_s3 + $0x10] sm:$0xff]   ;;  %vm871_vm2 = vcmask 171008   ;;  %vm885_vm3 = vcmask 166912  }
  0x5d   :  { %1027 = vmatprep.subr.bf16.mxu1 %v1358_v0  ;;  %1043 = vmatprep.mubr.msk.bf16.mxu1 %vm1359_vm0, %v1358_v0  ;;  %v1159_v4 = vld [vmem:[%s1667_s3] sm:$0xff]   ;;  %v119_v5 = vpack.c.bf16 %v118_v3, %v118_v3  ;;  %v1162_v8 = vld [vmem:[%s1667_s3 + $0x18] sm:$0xff]   ;;  %v1164_v10 = vld [vmem:[%s1667_s3 + $0x28] sm:$0xff]  }
  0x5e   :  { %1020 = vmatpush3.bf16.msra.mxu0 %v1157_v1  ;;  %1028 = vmatpush3.bf16.msra.mxu1 %v1159_v4  ;;  %v1163_v9 = vld [vmem:[%s1667_s3 + $0x20] sm:$0xff]   ;;  %v1165_v11 = vld [vmem:[%s1667_s3 + $0x30] sm:$0xff]   ;;  %v1166_v12 = vld [vmem:[%s1667_s3 + $0x38] sm:$0xff]  }
  0x5f   :  { %1021 = vmatprep.subr.bf16.mxu0 %v1358_v0  ;;  %1029 = vmatprep.subr.bf16.mxu1 %v1358_v0  ;;  %v1167_v13 = vld [vmem:[#allocation5] sm:$0xff]   ;;  %v1168_v14 = vld [vmem:[#allocation5 + $0x8] sm:$0xff]   ;;  %v1169_v15 = vld [vmem:[#allocation5 + $0x10] sm:$0xff]  }
  0x60   :  { %v1170_v16 = vld [vmem:[#allocation5 + $0x18] sm:$0xff]   ;;  %v1171_v17 = vld [vmem:[#allocation5 + $0x20] sm:$0xff]   ;;  %v1172_v18 = vld [vmem:[#allocation5 + $0x28] sm:$0xff]  }
  0x61   :  { %v904_v19 = vld [vmem:[%s1666_s2] ss:$0 sm:$0xff]  ;;  %v1173_v28 = vld [vmem:[#allocation5 + $0x30] sm:$0xff]   ;;  %v1175_v30 = vld [vmem:[#allocation7] sm:$0xff]  }
  0x62   :  { %1022 = vmatpush3.bf16.msra.mxu0 %v1158_v2  ;;  %1030 = vmatpush3.bf16.msra.mxu1 %v1160_v6  ;;  %v1174_v29 = vld [vmem:[#allocation5 + $0x38] sm:$0xff]   ;;  %v1176_v31 = vld [vmem:[#allocation7 + $0x8] sm:$0xff]   ;;  %v1177_v32 = vld [vmem:[#allocation7 + $0x10] sm:$0xff]  }
  0x63   :  { %1047 = vmatprep.subr.bf16.mxu0 %v1358_v0  ;;  %1031 = vmatprep.subr.bf16.mxu1 %v1358_v0  ;;  %v1178_v33 = vld [vmem:[#allocation7 + $0x18] sm:$0xff]   ;;  %v1179_v34 = vld [vmem:[#allocation7 + $0x20] sm:$0xff]   ;;  %v1180_v35 = vld [vmem:[#allocation7 + $0x28] sm:$0xff]  }
  0x64   :  { %v908_v36 = vld [vmem:[%s1668_s4] ss:$0 sm:$0xff]  ;;  %v1181_v45 = vld [vmem:[#allocation7 + $0x30] sm:$0xff]   ;;  %v1183_v47 = vld [vmem:[#allocation8] sm:$0xff]  }
  0x65   :  { %1024 = vmatmul.mubr.msk.bf16.vlgmr.msra.gmra.mrb[0].mxu0 %vm143_vm1, %v119_v5  ;;  %v1182_v46 = vld [vmem:[#allocation7 + $0x38] sm:$0xff]   ;;  %v1184_v48 = vld [vmem:[#allocation8 + $0x8] sm:$0xff]   ;;  %v1185_v49 = vld [vmem:[#allocation8 + $0x10] sm:$0xff]  }
  0x66   :  { %1063 = vmatprep.mubr.msk.bf16.mxu0 %vm1359_vm0, %v1358_v0  ;;  %1032 = vmatpush3.bf16.msra.mxu1 %v1161_v7  ;;  %v1186_v50 = vld [vmem:[#allocation8 + $0x18] sm:$0xff]   ;;  %v1187_v51 = vld [vmem:[#allocation8 + $0x20] sm:$0xff]   ;;  %v1188_v52 = vld [vmem:[#allocation8 + $0x28] sm:$0xff]  }
  0x67   :  { %1033 = vmatprep.subr.bf16.mxu1 %v1358_v0  ;;  %1048 = vmatpush3.bf16.msra.mxu0 %v1167_v13  ;;  %v917_v53 = vld [vmem:[%s1670_s6] ss:$0 sm:$0xff]  ;;  %v1189_v62 = vld [vmem:[#allocation8 + $0x30] sm:$0xff]   ;;  %v1191_v1 = vld [vmem:[#allocation10] sm:$0xff]  }
  0x68   :  { %1049 = vmatprep.subr.bf16.mxu0 %v1358_v0  ;;  %v1190_v63 = vld [vmem:[#allocation8 + $0x38] sm:$0xff]   ;;  %v1192_v2 = vld [vmem:[#allocation10 + $0x8] sm:$0xff]   ;;  %v1193_v3 = vld [vmem:[#allocation10 + $0x10] sm:$0xff]  }
  0x69   :  { %v1194_v4 = vld [vmem:[#allocation10 + $0x18] sm:$0xff]   ;;  %v1195_v5 = vld [vmem:[#allocation10 + $0x20] sm:$0xff]   ;;  %v1196_v6 = vld [vmem:[#allocation10 + $0x28] sm:$0xff]  }
  0x6a   :  { %1034 = vmatpush3.bf16.msra.mxu1 %v1162_v8  ;;  %v926_v7 = vld [vmem:[%s1672_s8] ss:$0 sm:$0xff] }
  0x6b   :  { %1035 = vmatprep.subr.bf16.mxu1 %v1358_v0  ;;  %1050 = vmatpush3.bf16.msra.mxu0 %v1168_v14 }
  0x6c   :  { %1051 = vmatprep.subr.bf16.mxu0 %v1358_v0 }
  0x6e   :  { %1036 = vmatpush3.bf16.msra.mxu1 %v1163_v9 }
  0x6f   :  { %1037 = vmatprep.subr.bf16.mxu1 %v1358_v0  ;;  %1052 = vmatpush3.bf16.msra.mxu0 %v1169_v15 }
  0x70   :  { %1053 = vmatprep.subr.bf16.mxu0 %v1358_v0 }
  0x72   :  { %1038 = vmatpush3.bf16.msra.mxu1 %v1164_v10 }
  0x73   :  { %1039 = vmatprep.subr.bf16.mxu1 %v1358_v0  ;;  %1054 = vmatpush3.bf16.msra.mxu0 %v1170_v16  ;;  %v1197_v16 = vld [vmem:[#allocation10 + $0x30] sm:$0xff]  }
  0x74   :  { %1055 = vmatprep.subr.bf16.mxu0 %v1358_v0 }
  0x76   :  { %1040 = vmatpush3.bf16.msra.mxu1 %v1165_v11 }
  0x77   :  { %1041 = vmatprep.subr.bf16.mxu1 %v1358_v0  ;;  %1056 = vmatpush3.bf16.msra.mxu0 %v1171_v17  ;;  %v1198_v17 = vld [vmem:[#allocation10 + $0x38] sm:$0xff]  }
  0x78   :  { %1057 = vmatprep.subr.bf16.mxu0 %v1358_v0 }
  0x7a   :  { %1042 = vmatpush3.bf16.msra.mxu1 %v1166_v12 }
  0x7b   :  { %1067 = vmatprep.subr.bf16.mxu1 %v1358_v0  ;;  %1058 = vmatpush3.bf16.msra.mxu0 %v1172_v18  ;;  %v1199_v18 = vld [vmem:[%s1677_s13] sm:$0xff]  }
  0x7c   :  { %1059 = vmatprep.subr.bf16.mxu0 %v1358_v0 }
  0x7f   :  { %1060 = vmatpush3.bf16.msra.mxu0 %v1173_v28 }
  0x80   :  { %1061 = vmatprep.subr.bf16.mxu0 %v1358_v0 }
  0x83   :  { %1062 = vmatpush3.bf16.msra.mxu0 %v1174_v29 }
  0x84   :  { %1087 = vmatprep.subr.bf16.mxu0 %v1358_v0 }
 0x138   :  { %v181_v20 = vpop.f32.mrb[0].mxu0 }
 0x139   :  { %v182_v21 = vadd.f32 %v904_v19, %v181_v20  ;;  %v1025_v22 = vpop.f32.mrb[1].mxu0  ;;  %v1200_v19 = vld [vmem:[%s1677_s13 + $0x8] sm:$0xff]   ;;  %v1201_v20 = vld [vmem:[%s1677_s13 + $0x10] sm:$0xff]  }
 0x13a   :  { %v184_v23 = vpop.f32.mrb[2].mxu0  ;;  %v1203_v22 = vld [vmem:[%s1677_s13 + $0x20] sm:$0xff]  }
 0x13b   :  { %v187_v24 = vmul.f32 0.2, %v182_v21  ;;  %v1026_v25 = vpop.f32.mrb[3].mxu0  ;;  %v1204_v23 = vld [vmem:[%s1677_s13 + $0x28] sm:$0xff]  }
 0x13d   :  { %v188_v26 = vmax.f32 %v182_v21, %v187_v24  ;;  %v1202_v21 = vld [vmem:[%s1677_s13 + $0x18] sm:$0xff]   ;;  %v935_v24 = vld [vmem:[%s1674_s10] ss:$0 sm:$0xff] }
 0x13f   :  { %v189_v27 = vpack.c.bf16 %v188_v26, %v188_v26 }
 0x141   :  { %1044 = vmatmul.mubr.bf16.vlgmr.msra.gmra.mrb[0].mxu1 %v189_v27 }
 0x142   :  { %1083 = vmatprep.mubr.msk.bf16.mxu1 %vm1359_vm0, %v1358_v0  ;;  %1068 = vmatpush3.bf16.msra.mxu1 %v1175_v30 }
 0x143   :  { %1069 = vmatprep.subr.bf16.mxu1 %v1358_v0 }
 0x146   :  { %1070 = vmatpush3.bf16.msra.mxu1 %v1176_v31 }
 0x147   :  { %1071 = vmatprep.subr.bf16.mxu1 %v1358_v0 }
 0x14a   :  { %1072 = vmatpush3.bf16.msra.mxu1 %v1177_v32 }
 0x14b   :  { %1073 = vmatprep.subr.bf16.mxu1 %v1358_v0 }
 0x14e   :  { %1074 = vmatpush3.bf16.msra.mxu1 %v1178_v33  ;;  %v1205_v33 = vld [vmem:[%s1677_s13 + $0x30] sm:$0xff]  }
 0x14f   :  { %1075 = vmatprep.subr.bf16.mxu1 %v1358_v0 }
 0x152   :  { %1076 = vmatpush3.bf16.msra.mxu1 %v1179_v34  ;;  %v1206_v34 = vld [vmem:[%s1677_s13 + $0x38] sm:$0xff]  }
 0x153   :  { %1077 = vmatprep.subr.bf16.mxu1 %v1358_v0 }
 0x156   :  { %1078 = vmatpush3.bf16.msra.mxu1 %v1180_v35  ;;  %v944_v35 = vld [vmem:[%s1676_s12] ss:$0 sm:$0xff]  ;;  %s1360_s12 = smov [#allocation11]  }
 0x157   :  { %1079 = vmatprep.subr.bf16.mxu1 %v1358_v0  ;;  %s893_s13 = sshll.u32 %s1360_s12, 4  ;;  %s894_s13 = int_to_ptr.vmem [resolvable:$true] %s893_s13 }
 0x158   :  { %p1326_p13 = scmp.lt.s32.totalorder %s894_s13, %s894_s13 }
 0x15a   :  { %1080 = vmatpush3.bf16.msra.mxu1 %v1181_v45 }
 0x15b   :  { %1081 = vmatprep.subr.bf16.mxu1 %v1358_v0 }
 0x15e   :  { %1082 = vmatpush3.bf16.msra.mxu1 %v1182_v46 }
 0x15f   :  { %1107 = vmatprep.subr.bf16.mxu1 %v1358_v0 }
 0x214   :  { %v295_v37 = vpop.f32.mrb[0].mxu1 }
 0x215   :  { %v296_v38 = vadd.f32 %v908_v36, %v295_v37  ;;  %v1045_v39 = vpop.f32.mrb[1].mxu1 }
 0x216   :  { %v298_v40 = vpop.f32.mrb[2].mxu1 }
 0x217   :  { %v301_v41 = vmul.f32 0.2, %v296_v38  ;;  %v1046_v42 = vpop.f32.mrb[3].mxu1 }
 0x219   :  { %v302_v43 = vmax.f32 %v296_v38, %v301_v41 }
 0x21b   :  { %v303_v44 = vpack.c.bf16 %v302_v43, %v302_v43 }
 0x21d   :  { %1064 = vmatmul.mubr.bf16.vlgmr.msra.gmra.mrb[4].mxu0 %v303_v44 }
 0x21e   :  { %1103 = vmatprep.mubr.msk.bf16.mxu0 %vm1359_vm0, %v1358_v0  ;;  %1088 = vmatpush3.bf16.msra.mxu0 %v1183_v47 }
 0x21f   :  { %1089 = vmatprep.subr.bf16.mxu0 %v1358_v0 }
 0x222   :  { %1090 = vmatpush3.bf16.msra.mxu0 %v1184_v48 }
 0x223   :  { %1091 = vmatprep.subr.bf16.mxu0 %v1358_v0 }
 0x226   :  { %1092 = vmatpush3.bf16.msra.mxu0 %v1185_v49 }
 0x227   :  { %1093 = vmatprep.subr.bf16.mxu0 %v1358_v0 }
 0x22a   :  { %1094 = vmatpush3.bf16.msra.mxu0 %v1186_v50 }
 0x22b   :  { %1095 = vmatprep.subr.bf16.mxu0 %v1358_v0 }
 0x22e   :  { %1096 = vmatpush3.bf16.msra.mxu0 %v1187_v51 }
 0x22f   :  { %1097 = vmatprep.subr.bf16.mxu0 %v1358_v0 }
 0x232   :  { %1098 = vmatpush3.bf16.msra.mxu0 %v1188_v52 }
 0x233   :  { %1099 = vmatprep.subr.bf16.mxu0 %v1358_v0 }
 0x236   :  { %1100 = vmatpush3.bf16.msra.mxu0 %v1189_v62 }
 0x237   :  { %1101 = vmatprep.subr.bf16.mxu0 %v1358_v0 }
 0x23a   :  { %1102 = vmatpush3.bf16.msra.mxu0 %v1190_v63 }
 0x23b   :  { %1127 = vmatprep.subr.bf16.mxu0 %v1358_v0 }
 0x2f0   :  { %v409_v54 = vpop.f32.mrb[4].mxu0 }
 0x2f1   :  { %v410_v55 = vadd.f32 %v917_v53, %v409_v54  ;;  %v1065_v56 = vpop.f32.mrb[5].mxu0 }
 0x2f2   :  { %v412_v57 = vpop.f32.mrb[6].mxu0 }
 0x2f3   :  { %v415_v58 = vmul.f32 0.2, %v410_v55  ;;  %v1066_v59 = vpop.f32.mrb[7].mxu0 }
 0x2f5   :  { %v416_v60 = vmax.f32 %v410_v55, %v415_v58 }
 0x2f7   :  { %v417_v61 = vpack.c.bf16 %v416_v60, %v416_v60 }
 0x2f9   :  { %1084 = vmatmul.mubr.bf16.vlgmr.msra.gmra.mrb[4].mxu1 %v417_v61 }
 0x2fa   :  { %1123 = vmatprep.mubr.msk.bf16.mxu1 %vm1359_vm0, %v1358_v0  ;;  %1108 = vmatpush3.bf16.msra.mxu1 %v1191_v1 }
 0x2fb   :  { %1109 = vmatprep.subr.bf16.mxu1 %v1358_v0 }
 0x2fe   :  { %1110 = vmatpush3.bf16.msra.mxu1 %v1192_v2 }
 0x2ff   :  { %1111 = vmatprep.subr.bf16.mxu1 %v1358_v0 }
 0x302   :  { %1112 = vmatpush3.bf16.msra.mxu1 %v1193_v3 }
 0x303   :  { %1113 = vmatprep.subr.bf16.mxu1 %v1358_v0 }
 0x306   :  { %1114 = vmatpush3.bf16.msra.mxu1 %v1194_v4 }
 0x307   :  { %1115 = vmatprep.subr.bf16.mxu1 %v1358_v0 }
 0x30a   :  { %1116 = vmatpush3.bf16.msra.mxu1 %v1195_v5 }
 0x30b   :  { %1117 = vmatprep.subr.bf16.mxu1 %v1358_v0 }
 0x30e   :  { %1118 = vmatpush3.bf16.msra.mxu1 %v1196_v6 }
 0x30f   :  { %1119 = vmatprep.subr.bf16.mxu1 %v1358_v0 }
 0x312   :  { %1120 = vmatpush3.bf16.msra.mxu1 %v1197_v16 }
 0x313   :  { %1121 = vmatprep.subr.bf16.mxu1 %v1358_v0 }
 0x316   :  { %1122 = vmatpush3.bf16.msra.mxu1 %v1198_v17 }
 0x3cc   :  { %v523_v8 = vpop.f32.mrb[4].mxu1 }
 0x3cd   :  { %v524_v9 = vadd.f32 %v926_v7, %v523_v8  ;;  %v1085_v10 = vpop.f32.mrb[5].mxu1 }
 0x3ce   :  { %v526_v11 = vpop.f32.mrb[6].mxu1 }
 0x3cf   :  { %v529_v12 = vmul.f32 0.2, %v524_v9  ;;  %v1086_v13 = vpop.f32.mrb[7].mxu1 }
 0x3d1   :  { %v530_v14 = vmax.f32 %v524_v9, %v529_v12 }
 0x3d3   :  { %v531_v15 = vpack.c.bf16 %v530_v14, %v530_v14 }
 0x3d5   :  { %1104 = vmatmul.mubr.bf16.vlgmr.msra.gmra.mrb[8].mxu0 %v531_v15 }
 0x3d6   :  { %1143 = vmatprep.mubr.msk.bf16.mxu0 %vm1359_vm0, %v1358_v0  ;;  %1128 = vmatpush3.bf16.msra.mxu0 %v1199_v18 }
 0x3d7   :  { %1129 = vmatprep.subr.bf16.mxu0 %v1358_v0 }
 0x3da   :  { %1130 = vmatpush3.bf16.msra.mxu0 %v1200_v19 }
 0x3db   :  { %1131 = vmatprep.subr.bf16.mxu0 %v1358_v0 }
 0x3de   :  { %1132 = vmatpush3.bf16.msra.mxu0 %v1201_v20 }
 0x3df   :  { %1133 = vmatprep.subr.bf16.mxu0 %v1358_v0 }
 0x3e2   :  { %1134 = vmatpush3.bf16.msra.mxu0 %v1202_v21 }
 0x3e3   :  { %1135 = vmatprep.subr.bf16.mxu0 %v1358_v0 }
 0x3e6   :  { %1136 = vmatpush3.bf16.msra.mxu0 %v1203_v22 }
 0x3e7   :  { %1137 = vmatprep.subr.bf16.mxu0 %v1358_v0 }
 0x3ea   :  { %1138 = vmatpush3.bf16.msra.mxu0 %v1204_v23 }
 0x3eb   :  { %1139 = vmatprep.subr.bf16.mxu0 %v1358_v0 }
 0x3ee   :  { %1140 = vmatpush3.bf16.msra.mxu0 %v1205_v33 }
 0x3ef   :  { %1141 = vmatprep.subr.bf16.mxu0 %v1358_v0  ;;  %v953_v0 = vld [vmem:[%s1678_s14] ss:$0 sm:$0xff]  ;;  %s1321_s14 = scalar_lea.vmem %s894_s13, 64 }
 0x3f0   :  { %p1322_p12 = scmp.ne.s32.totalorder %s894_s13, %s1321_s14  ;;  %p1327_p0 = scmp.lt.s32.totalorder %s1321_s14, %s1321_s14 }
 0x3f2   :  { %1142 = vmatpush3.bf16.msra.mxu0 %v1206_v34  ;;  %p1328_p1 = por %p1327_p0, %p1326_p13 }
 0x3f4   :  { %p1329_p2 = pnand %p1328_p1, %p1322_p12 }
 0x4a8   :  { %v637_v25 = vpop.f32.mrb[8].mxu0 }
 0x4a9   :  { %v638_v26 = vadd.f32 %v935_v24, %v637_v25  ;;  %v1105_v27 = vpop.f32.mrb[9].mxu0 }
 0x4aa   :  { %v640_v28 = vpop.f32.mrb[10].mxu0 }
 0x4ab   :  { %v643_v29 = vmul.f32 0.2, %v638_v26  ;;  %v1106_v30 = vpop.f32.mrb[11].mxu0 }
 0x4ad   :  { %v644_v31 = vmax.f32 %v638_v26, %v643_v29 }
 0x4af   :  { %v645_v32 = vpack.c.bf16 %v644_v31, %v644_v31 }
 0x4b1   :  { %1124 = vmatmul.mubr.bf16.vlgmr.msra.gmra.mrb[8].mxu1 %v645_v32 }
 0x584   :  { %v751_v36 = vpop.f32.mrb[8].mxu1 }
 0x585   :  { %v752_v37 = vadd.f32 %v944_v35, %v751_v36  ;;  %v1125_v38 = vpop.f32.mrb[9].mxu1 }
 0x586   :  { %v754_v39 = vpop.f32.mrb[10].mxu1 }
 0x587   :  { %v757_v40 = vmul.f32 0.2, %v752_v37  ;;  %v1126_v41 = vpop.f32.mrb[11].mxu1 }
 0x589   :  { %v758_v42 = vmax.f32 %v752_v37, %v757_v40 }
 0x58b   :  { %v759_v43 = vpack.c.bf16 %v758_v42, %v758_v42 }
 0x58d   :  { %1144 = vmatmul.mubr.bf16.vlgmr.msra.gmra.mrb[12].mxu0 %v759_v43 }
 0x660   :  { %v865_v44 = vpop.f32.mrb[12].mxu0 }
 0x661   :  { %v866_v45 = vadd.f32 %v953_v0, %v865_v44  ;;  %v1145_v46 = vpop.f32.mrb[13].mxu0 }
 0x662   :  { %v868_v47 = vpop.f32.mrb[14].mxu0 }
 0x663   :  { %v1146_v48 = vpop.f32.mrb[15].mxu0  ;;  %v872_v49 = vsel %vm871_vm2, %v866_v45, -inf }
 0x664   :  { %873 = vmax.xlane.f32.xlu0 %v872_v49 }
 0x6f1   :  { %v874_v50 = vpop.xlane.xlu0 %873 }
 0x6f2   :  { %v875_v51 = vsub.f32 %v866_v45, %v874_v50 }
 0x6f4   :  { %v876_v52 = vmul.f32 1.442695, %v875_v51 }
 0x6f6   :  { %1207 = vpow2.f32 %v876_v52 }
 0x700   :  { %v1208_v53 = vpop.eup %1207 }
 0x701   :  { %v878_v54 = vsel %vm871_vm2, %v1208_v53, 0.0 }
 0x702   :  { %879 = vadd.xlane.f32.xlu0 %v878_v54 }
 0x78f   :  { %v880_v55 = vpop.xlane.xlu0 %879 }
 0x790   :  { %1209 = vlog2.f32 %v880_v55 }
 0x79a   :  { %v1210_v56 = vpop.eup %1209 }
 0x79b   :  { %v882_v57 = vmul.f32 0.6931472, %v1210_v56 }
 0x79d   :  { %v883_v58 = vsub.f32 %v875_v51, %v882_v57 }
 0x79f   :  { %v884_v59 = vpack.c.bf16 %v883_v58, %v883_v58 }
 0x7a1   :  { %886 = vst.msk [vmem:[#allocation11] sm:$0xf] %vm885_vm3, %v884_v59 }
 0x7a2   :  { %1332 = shalt.err (!%p1329_p2)
}
 0x7a3   :  { %s1682_s4 = sld [smem:[#allocation16_spill]] }
 0x7a9   :  { %s1333_s17 = scalar_lea.hbm %s1682_s4, 64 }
 0x7aa   :  { %p1334_p3 = scmp.ne.s32.totalorder %s1682_s4, %s1333_s17  ;;  %p1337_p4 = scmp.lt.u32.totalorder %s1333_s17, %s1682_s4 }
 0x7ac   :  { %p1339_p5 = pnand %p1337_p4, %p1334_p3 }
 0x7ae   :  { %1342 = shalt.err (!%p1339_p5)
}
 0x7af   :  { %896 = dma.vmem_to_hbm [thread:$0]  %s894_s13, 64, %s1682_s4, [#allocation4]  }
 0x7b0   :  { %1349 = dma.done.wait [#allocation4], 64  }
 0x7b1   :  { %1350 = vsyncadd [#allocation4], 4294967232 }
 0x7b2   :  { %900 = vsyncpa [#allocation3], 1 }
 0x7b3   :  { %901 = vsyncpa [#allocation6], 1 }
 0x7b4   :  { %902 = vsyncpa [#allocation9], 1 }
 0x7b5   :  { %903 = vsyncpa [#allocation4], 1 }

</bundles_post_ra>
